<compile_context>
chip_gen: v6e
topology: v6e:2x2x1
jax: 0.10.0
libtpu: 0.0.40
codegen_flags: <defaults>
</compile_context>

<pallas_src>
import functools

import jax
import jax.numpy as jnp
from jax.experimental import pallas as pl
from jax.experimental.pallas import tpu as pltpu


# Mixed precision: bf16 operands on the MXU, f32 accumulation / bias / outputs.
COMPUTE_DTYPE = jnp.bfloat16
# Columns per grid step. 2048 cols keeps double-buffered blocks well under the
# scoped-VMEM default on v5e/v6e and under v7x's smaller 64 MiB VMEM.
_TM_CAP = 2048


# ---------------------------------------------------------------------------
# Pallas kernels
# ---------------------------------------------------------------------------
def _conv_relu_t_kernel(w_ref, b_ref, p_ref, out_ref):
    """Eval: out_T[co, m] = relu(sum_k w[co, k] * patches_T[k, m] + b[co])."""
    acc = jnp.dot(w_ref[...], p_ref[...], preferred_element_type=jnp.float32)
    acc = jnp.maximum(acc + b_ref[...], 0.0)          # bias bcast over lanes
    out_ref[...] = acc.astype(out_ref.dtype)          # lane-dense (Cout, tm)


def _conv_relu_colsum_kernel(w_ref, b_ref, p_ref, colsum_ref):
    """Train: lane-dense per-column partial sums of relu(conv).

    colsum[0, m] = sum_co relu(conv)[co, m]; the wrapper reduces across
    columns/tiles, so no resident scalar accumulator is needed and the grid
    axis stays "parallel".
    """
    acc = jnp.dot(w_ref[...], p_ref[...], preferred_element_type=jnp.float32)
    acc = jnp.maximum(acc + b_ref[...], 0.0)
    colsum_ref[...] = jnp.sum(acc, axis=0, keepdims=True)   # (1, tm)


# ---------------------------------------------------------------------------
# Wrapper: layout plumbing + pallas_call
# ---------------------------------------------------------------------------
@functools.partial(jax.jit, static_argnames=("is_train",))
def step_forward(x_nchw, w_conv, b_conv, *, is_train):
    """Step.forward. w_conv: (Cout, Cin, k, k) PyTorch layout."""
    Cout, Cin, k, _ = w_conv.shape
    N, _, H, W = x_nchw.shape
    M = N * H * W
    K = k * k * Cin
    pad = (k - 1) // 2

    # ---- glue: im2col directly in transposed (K, M) layout ----------------
    # TODO(synk): for large inputs, fuse the k*k shifts into the kernel as 9
    # accumulating (Cout x Cin) matmuls over the raw NHWC input to avoid the
    # 9x im2col HBM blowup; materialized here for simplicity.
    x_nhwc = jnp.transpose(x_nchw, (0, 2, 3, 1))
    xp = jnp.pad(x_nhwc, ((0, 0), (pad, pad), (pad, pad), (0, 0)))
    shifts = [xp[:, dh:dh + H, dw:dw + W, :]                  # each (N,H,W,Cin)
              for dh in range(k) for dw in range(k)]
    patches = jnp.stack(shifts, axis=0)                       # (k*k,N,H,W,Cin)
    patches_t = jnp.transpose(patches, (0, 4, 1, 2, 3)).reshape(K, M)

    # conv weight (Cout, Cin, kh, kw) -> (Cout, kh, kw, Cin) -> (Cout, K)
    w_t = jnp.transpose(w_conv, (0, 2, 3, 1)).reshape(Cout, K)
    bias_col = b_conv.reshape(Cout, 1).astype(jnp.float32)

    # ---- lane-dense tiling over the big M axis -----------------------------
    tm = min(pl.cdiv(M, 128) * 128, _TM_CAP)
    m_pad = pl.cdiv(M, tm) * tm
    grid = m_pad // tm
    if m_pad != M:
        # Padded columns produce relu(bias); they are sliced off below.
        patches_t = jnp.pad(patches_t, ((0, 0), (0, m_pad - M)))

    patches_t = patches_t.astype(COMPUTE_DTYPE)
    w_t = w_t.astype(COMPUTE_DTYPE)

    # Weight / bias have constant block indices; Pallas skips re-DMA when the
    # block index is unchanged between steps, so no pipeline_mode override.
    in_specs = [
        pl.BlockSpec((Cout, K), lambda i: (0, 0)),    # weight (whole)
        pl.BlockSpec((Cout, 1), lambda i: (0, 0)),    # bias (whole)
        pl.BlockSpec((K, tm), lambda i: (0, i)),      # patches, lane-tiled
    ]
    cparams = pltpu.CompilerParams(dimension_semantics=("parallel",))

    if is_train:
        # TODO(synk): PyTorch's l.backward() also populates parameter .grad as
        # a side effect; only the returned scalar loss is reproduced here.
        colsums = pl.pallas_call(
            _conv_relu_colsum_kernel,
            out_shape=jax.ShapeDtypeStruct((grid, tm), jnp.float32),
            grid=(grid,),
            in_specs=in_specs,
            out_specs=pl.BlockSpec((1, tm), lambda i: (i, 0)),
            compiler_params=cparams,
        )(w_t, bias_col, patches_t)
        flat = colsums.reshape(-1)
        if m_pad != M:
            flat = flat[:M]
        return jnp.sum(flat)

    out_t = pl.pallas_call(
        _conv_relu_t_kernel,
        out_shape=jax.ShapeDtypeStruct((Cout, m_pad), jnp.float32),
        grid=(grid,),
        in_specs=in_specs,
        out_specs=pl.BlockSpec((Cout, tm), lambda i: (0, i)),
        compiler_params=cparams,
    )(w_t, bias_col, patches_t)
    if m_pad != M:
        out_t = out_t[:, :M]
    # (Cout, N*H*W) -> (N, Cout, H, W)
    return jnp.transpose(out_t.reshape(Cout, N, H, W), (1, 0, 2, 3))


# ---------------------------------------------------------------------------
if __name__ == "__main__":
    key = jax.random.PRNGKey(0)
    kx, kw, kb = jax.random.split(key, 3)

    N, Cin, H, W = 2, 4, 16, 16
    Cout, K = 8, 3

    x = jax.random.normal(kx, (N, Cin, H, W), dtype=jnp.float32)
    w_conv = jax.random.normal(kw, (Cout, Cin, K, K), dtype=jnp.float32) * 0.1
    b_conv = jax.random.normal(kb, (Cout,), dtype=jnp.float32) * 0.1

    # eval mode: returns the model output (NCHW)
    y_eval = jax.block_until_ready(step_forward(x, w_conv, b_conv, is_train=False))
    assert y_eval.shape == (N, Cout, H, W)

    # train mode: returns scalar loss = sum(model(x))
    loss = jax.block_until_ready(step_forward(x, w_conv, b_conv, is_train=True))
    assert loss.shape == ()

    # Cross-check against XLA conv reference (f32). Kernel uses bf16 operands
    # with f32 accumulation, so tolerances are set accordingly.
    ref = jax.lax.conv_general_dilated(
        x, w_conv, window_strides=(1, 1), padding="SAME",
        dimension_numbers=("NCHW", "OIHW", "NCHW"))
    ref = jnp.maximum(ref + b_conv.reshape(1, Cout, 1, 1), 0.0)
    assert jnp.allclose(y_eval, ref, rtol=5e-2, atol=5e-2), "eval mismatch"
    assert jnp.allclose(loss, jnp.sum(ref), rtol=2e-2, atol=0.5), "loss mismatch"

    print("KERNEL_OK")
</pallas_src>

<mosaic_0001>
module attributes {stable_mosaic.version = 11 : i64} {
  func.func @_conv_relu_t_kernel(%arg0: i32, %arg1: memref<8x36xbf16, #tpu.memory_space<vmem>>, %arg2: memref<8x1xf32, #tpu.memory_space<vmem>>, %arg3: memref<36x512xbf16, #tpu.memory_space<vmem>>, %arg4: memref<8x512xf32, #tpu.memory_space<vmem>>) attributes {dimension_semantics = [#tpu.dimension_semantics<parallel>], iteration_bounds = array<i64: 1>, scalar_prefetch = 0 : i64, scratch_operands = 0 : i64, tpu.core_type = #tpu.core_type<tc>, window_params = [{pipeline_mode = #tpu.pipeline_mode<synchronous>, transform_indices = @transform_0, window_bounds = array<i64: 8, 36>}, {pipeline_mode = #tpu.pipeline_mode<synchronous>, transform_indices = @transform_1, window_bounds = array<i64: 8, 1>}, {transform_indices = @transform_2, window_bounds = array<i64: 36, 512>}, {transform_indices = @transform_3, window_bounds = array<i64: 8, 512>}]} {
    %c0 = arith.constant 0 : index
    %c0_0 = arith.constant 0 : index
    %0 = vector.load %arg1[%c0, %c0_0] : memref<8x36xbf16, #tpu.memory_space<vmem>>, vector<8x36xbf16>
    %c0_1 = arith.constant 0 : index
    %c0_2 = arith.constant 0 : index
    %1 = vector.load %arg3[%c0_1, %c0_2] : memref<36x512xbf16, #tpu.memory_space<vmem>>, vector<36x512xbf16>
    %cst = arith.constant dense<0.000000e+00> : vector<8x512xf32>
    %2 = tpu.matmul %0, %1, %cst {dimension_numbers = #tpu.dot_dimension_numbers<[1], [0], [0], [1], [0, 0, 1, 1], [], []>} : vector<8x36xbf16>, vector<36x512xbf16>, vector<8x512xf32> -> vector<8x512xf32>
    %c0_3 = arith.constant 0 : index
    %c0_4 = arith.constant 0 : index
    %3 = vector.load %arg2[%c0_3, %c0_4] : memref<8x1xf32, #tpu.memory_space<vmem>>, vector<8x1xf32>
    %4 = vector.broadcast %3 : vector<8x1xf32> to vector<8x512xf32>
    %5 = arith.addf %2, %4 : vector<8x512xf32>
    %cst_5 = arith.constant 0.000000e+00 : f32
    %6 = vector.broadcast %cst_5 : f32 to vector<8x512xf32>
    %7 = arith.maximumf %5, %6 : vector<8x512xf32>
    %c0_6 = arith.constant 0 : index
    %c0_7 = arith.constant 0 : index
    %8 = vector.load %arg4[%c0_6, %c0_7] : memref<8x512xf32, #tpu.memory_space<vmem>>, vector<8x512xf32>
    tpu.vector_store %arg4[%c0_6, %c0_7], %7 {strides = array<i32>} : memref<8x512xf32, #tpu.memory_space<vmem>>, vector<8x512xf32>,
    return
  }
  func.func @transform_0(%arg0: i32) -> (i32, i32) {
    %c0_i32 = arith.constant 0 : i32
    %c0_i32_0 = arith.constant 0 : i32
    %c0_i32_1 = arith.constant 0 : i32
    return %c0_i32, %c0_i32_0 : i32, i32
  }
  func.func @transform_1(%arg0: i32) -> (i32, i32) {
    %c0_i32 = arith.constant 0 : i32
    %c0_i32_0 = arith.constant 0 : i32
    %c0_i32_1 = arith.constant 0 : i32
    return %c0_i32, %c0_i32_0 : i32, i32
  }
  func.func @transform_2(%arg0: i32) -> (i32, i32) {
    %c0_i32 = arith.constant 0 : i32
    %c0_i32_0 = arith.constant 0 : i32
    return %c0_i32, %arg0 : i32, i32
  }
  func.func @transform_3(%arg0: i32) -> (i32, i32) {
    %c0_i32 = arith.constant 0 : i32
    %c0_i32_0 = arith.constant 0 : i32
    return %c0_i32, %arg0 : i32, i32
  }
}

</mosaic_0001>

<bundles_post_ra>
// kernel: step_forward.1
= control target key start
LH: loop header
LB: loop body
LE: loop exit
PB: predicated region body
PF: predicated region fallthrough
CT: control target
= control target key end

     0   :  { %vm86_vm0 = vcmask 1041408   ;;  %v227_v2 = vmov 0   ;;  %vm82_vm1 = vcmask 293888   ;;  %s296_s2 = inlined_call_operand.vmem [shape: bf16[36,512], index: 2, kind: input, shape index: {}]   ;;  %s297_s1 = inlined_call_operand.vmem [shape: f32[8,1], index: 1, kind: input, shape index: {}]   ;;  %s298_s0 = inlined_call_operand.vmem [shape: bf16[8,36], index: 0, kind: input, shape index: {}]   ;;  %s299_s3 = inlined_call_operand.vmem [shape: f32[8,512], index: 3, kind: output, shape index: {}]  }
   0x1   :  { %v24_v0 = vld [vmem:[%s296_s2 + $0x40] sm:$0x33]  ;;  %v25_v1 = vld [vmem:[%s296_s2 + $0x48] sm:$0x33]  ;;  %131 = vmatprep.mubr.bf16.mxu0 %v227_v2  ;;  %172 = vmatprep.mubr.bf16.mxu1 %v227_v2 }
   0x2   :  { %v202_v3 = vcombine.high %v24_v0, %v24_v0  ;;  %v204_v4 = vcombine.high %v25_v1, %v25_v1  ;;  %v201_v5 = vcombine.low %v24_v0, %v24_v0  ;;  %v203_v6 = vcombine.low %v25_v1, %v25_v1  ;;  %v215_v7 = vld [vmem:[%s296_s2 + $0x24] ss:$16 sps:$4 sm:$0xff]   ;;  %210 = vset.pattern.permute.xlu0 %v227_v2  ;;  %v217_v8 = vld [vmem:[%s296_s2 + $0x2c] ss:$16 sps:$4 sm:$0xff]   ;;  %v219_v11 = vld [vmem:[%s296_s2 + $0x20] ss:$16 sps:$4 sm:$0xff]  }
   0x3   :  { %v220_v12 = vld [vmem:[%s296_s2 + $0x28] ss:$16 sps:$4 sm:$0xff]   ;;  %v221_v13 = vld [vmem:[%s296_s2 + $0x4] ss:$16 sps:$4 sm:$0xff]   ;;  %v223_v14 = vld [vmem:[%s296_s2 + $0xc] ss:$16 sps:$4 sm:$0xff]  }
   0x4   :  { %205 = vmatprep.subr.msk.bf16.mxu0 %vm86_vm0, %v202_v3  ;;  %207 = vmatprep.subr.msk.bf16.mxu1 %vm86_vm0, %v204_v4  ;;  %v88_v9 = vsel %vm86_vm0, %v201_v5, 0  ;;  %v94_v10 = vsel %vm86_vm0, %v203_v6, 0  ;;  %v26_v15 = vld [vmem:[%s297_s1] sm:$0xff]  ;;  %v226_v17 = vld [vmem:[%s296_s2 + $0x8] ss:$16 sps:$4 sm:$0xff]  }
   0x5   :  { %110 = vmatpush1.bf16.msra.mxu0 %v88_v9  ;;  %151 = vmatpush1.bf16.msra.mxu1 %v94_v10  ;;  %v225_v16 = vld [vmem:[%s296_s2] ss:$16 sps:$4 sm:$0xff]  }
   0x6   :  { %111 = vmatprep.subr.bf16.mxu0 %v215_v7  ;;  %152 = vmatprep.subr.bf16.mxu1 %v217_v8  ;;  %v15_v18 = vld [vmem:[%s298_s0] sm:$0xf] }
   0x7   :  { %29 = vperm.xlu0 %210, %v26_v15  }
   0x9   :  { %112 = vmatpush1.bf16.msra.mxu0 %v219_v11  ;;  %153 = vmatpush1.bf16.msra.mxu1 %v220_v12 }
   0xa   :  { %113 = vmatprep.subr.bf16.mxu0 %v221_v13  ;;  %154 = vmatprep.subr.bf16.mxu1 %v223_v14 }
   0xd   :  { %114 = vmatpush1.bf16.msra.mxu0 %v225_v16  ;;  %155 = vmatpush1.bf16.msra.mxu1 %v226_v17 }
  0x10   :  { %206 = vmatmul.mubr.msk.bf16.vlgmr.msra.gmra.mxu0 %vm82_vm1, %v15_v18  ;;  %208 = vmatmul.mubr.msk.bf16.vlgmr.msra.gmra.mxu1 %vm82_vm1, %v15_v18 }
  0x82   :  { %v30_v19 = vpop.permute.xlu0 %29 }
  0xd0   :  { %v133_v20 = vpop.f32.mrf.mxu0  ;;  %v174_v21 = vpop.f32.mrf.mxu1 }
  0xd1   :  { %v134_v22 = vadd.f32 %v133_v20, %v30_v19  ;;  %v175_v23 = vadd.f32 %v174_v21, %v30_v19 }
  0xd2   :  { %v135_v24 = vpop.f32.mrf.mxu0  ;;  %v176_v25 = vpop.f32.mrf.mxu1 }
  0xd3   :  { %v181_v26 = vmax.f32 %v134_v22, 0.0  ;;  %v183_v27 = vmax.f32 %v175_v23, 0.0  ;;  %v136_v28 = vadd.f32 %v135_v24, %v30_v19  ;;  %v177_v29 = vadd.f32 %v176_v25, %v30_v19 }
  0xd4   :  { %v137_v30 = vpop.f32.mrf.mxu0  ;;  %v178_v31 = vpop.f32.mrf.mxu1 }
  0xd5   :  { %185 = vst [vmem:[%s299_s3] sm:$0xff] %v181_v26  ;;  %187 = vst [vmem:[%s299_s3 + $0x10] sm:$0xff] %v183_v27  ;;  %v182_v32 = vmax.f32 %v136_v28, 0.0  ;;  %v184_v33 = vmax.f32 %v177_v29, 0.0 }
  0xd6   :  { %v138_v34 = vpop.f32.mrf.mxu0  ;;  %v179_v35 = vpop.f32.mrf.mxu1 }
  0xd7   :  { %186 = vst [vmem:[%s299_s3 + $0x8] sm:$0xff] %v182_v32  ;;  %188 = vst [vmem:[%s299_s3 + $0x18] sm:$0xff] %v184_v33 }

</bundles_post_ra>
